<compile_context>
chip_gen: v5e
topology: v5e:2x2
jax: 0.10.0
libtpu: 0.0.40
codegen_flags: <defaults>
</compile_context>

<pallas_src>
import math

import jax
import jax.numpy as jnp
import numpy as np
from jax.experimental import pallas as pl
from jax.experimental.pallas import tpu as pltpu  # noqa: F401  (TPU backend)

# ---- model dims (small, consistent with the module) ----
B, S, H = 2, 8, 32          # batch, seq, hidden_size
NH = 4                      # num_attention_heads
HD = H // NH                # attention_head_size
I = 64                      # intermediate_size
LN_EPS = 1e-12              # layer_norm_eps (HF default)
SCALE = 1.0 / math.sqrt(HD)

# ---- packed parameter slab layout (rows x 128 lanes, f32) ----
_R_WQKV = 0      # rows [  0, 32) cols [0,96)  : [Wq*scale | Wk | Wv]
_R_WO = 32       # rows [ 32, 64) cols [0,32)  : attention output dense
_R_WI = 64       # rows [ 64, 96) cols [0,64)  : intermediate dense
_R_WO2 = 96      # rows [ 96,160) cols [0,32)  : FFN output dense
_R_VEC = 160     # rows [160,168): bqkv, bo, ln1_g, ln1_b, bi, bo2, ln2_g, ln2_b
_SLAB_ROWS = 168


def _layer_norm(x, gamma, beta):
    mu = jnp.mean(x, axis=-1, keepdims=True)
    var = jnp.mean((x - mu) ** 2, axis=-1, keepdims=True)
    return (x - mu) * jax.lax.rsqrt(var + LN_EPS) * gamma + beta


def _gelu(x):
    # exact erf-based gelu, matching the reference `gelu` (HF 'gelu')
    return x * 0.5 * (1.0 + jax.lax.erf(x * (1.0 / math.sqrt(2.0))))


def roberta_layer_kernel(x_ref, mask_ref, p_ref, o_ref):
    # --- carve static, 8-row-aligned views out of the single parameter slab ---
    wqkv = p_ref[_R_WQKV:_R_WQKV + H, 0:3 * H]     # (H, 3H), Q part pre-scaled
    wo = p_ref[_R_WO:_R_WO + H, 0:H]               # (H, H)
    wi = p_ref[_R_WI:_R_WI + H, 0:I]               # (H, I)
    wo2 = p_ref[_R_WO2:_R_WO2 + I, 0:H]            # (I, H)
    vecs = p_ref[_R_VEC:_R_VEC + 8, :]             # (8, 128) aligned tile load
    bqkv = vecs[0:1, 0:3 * H]                      # (1, 3H), bq part pre-scaled
    bo = vecs[1:2, 0:H]
    ln1_g = vecs[2:3, 0:H]
    ln1_b = vecs[3:4, 0:H]
    bi = vecs[4:5, 0:I]
    bo2 = vecs[5:6, 0:H]
    ln2_g = vecs[6:7, 0:H]
    ln2_b = vecs[7:8, 0:H]

    x = x_ref[...]                                 # (B, S, H)
    mask = mask_ref[...]                           # (B, 1, S) additive mask
    x2 = x.reshape(B * S, H)                       # fold batch into rows

    # --- RobertaSelfAttention: fused QKV, one MXU push ---
    qkv = jnp.dot(x2, wqkv, preferred_element_type=jnp.float32) + bqkv  # (B*S, 3H)

    # tiny per-head attention core (S=8, HD=8), batched over B
    ctx_heads = []
    for n in range(NH):
        qn = qkv[:, n * HD:(n + 1) * HD].reshape(B, S, HD)
        kn = qkv[:, H + n * HD:H + (n + 1) * HD].reshape(B, S, HD)
        vn = qkv[:, 2 * H + n * HD:2 * H + (n + 1) * HD].reshape(B, S, HD)

        s = jnp.einsum('bqd,bkd->bqk', qn, kn,
                       preferred_element_type=jnp.float32)    # (B, S, S)
        s = s + mask                                          # (B,1,S) broadcast
        s = s - jnp.max(s, axis=-1, keepdims=True)
        p = jnp.exp(s)
        denom = jnp.sum(p, axis=-1, keepdims=True)
        p = p * pl.reciprocal(denom, approx=True)             # softmax over keys
        ctx_heads.append(jnp.einsum('bqk,bkd->bqd', p, vn,
                                    preferred_element_type=jnp.float32))

    # --- RobertaSelfOutput: single output-proj matmul + residual + LN ---
    ctx = jnp.concatenate(ctx_heads, axis=-1).reshape(B * S, H)   # (B*S, H)
    attn = jnp.dot(ctx, wo, preferred_element_type=jnp.float32) + bo
    attn_out = _layer_norm(attn + x2, ln1_g, ln1_b)

    # --- RobertaIntermediate (gelu) + RobertaOutput (dense + residual + LN) ---
    inter = _gelu(jnp.dot(attn_out, wi, preferred_element_type=jnp.float32) + bi)
    ffn = jnp.dot(inter, wo2, preferred_element_type=jnp.float32) + bo2
    out = _layer_norm(ffn + attn_out, ln2_g, ln2_b)

    o_ref[...] = out.reshape(B, S, H).astype(o_ref.dtype)


def pack_params(params):
    """One-time, host-side packing of all weights into a single (168,128) slab.

    Call once at weight-load time; the slab is what gets passed per forward call.
    1/sqrt(head_dim) is folded into the Q weights/bias here.
    """
    (wq, bq, wk, bk, wv, bv, wo, bo, ln1_g, ln1_b,
     wi, bi, wo2, bo2, ln2_g, ln2_b) = [np.asarray(p, np.float32) for p in params]

    slab = np.zeros((_SLAB_ROWS, 128), np.float32)
    slab[_R_WQKV:_R_WQKV + H, 0:3 * H] = np.concatenate(
        [wq * SCALE, wk, wv], axis=1)                     # (H, 3H)
    slab[_R_WO:_R_WO + H, 0:H] = wo
    slab[_R_WI:_R_WI + H, 0:I] = wi
    slab[_R_WO2:_R_WO2 + I, 0:H] = wo2
    slab[_R_VEC + 0, 0:3 * H] = np.concatenate(
        [bq.reshape(H) * SCALE, bk.reshape(H), bv.reshape(H)])
    slab[_R_VEC + 1, 0:H] = bo.reshape(H)
    slab[_R_VEC + 2, 0:H] = ln1_g.reshape(H)
    slab[_R_VEC + 3, 0:H] = ln1_b.reshape(H)
    slab[_R_VEC + 4, 0:I] = bi.reshape(I)
    slab[_R_VEC + 5, 0:H] = bo2.reshape(H)
    slab[_R_VEC + 6, 0:H] = ln2_g.reshape(H)
    slab[_R_VEC + 7, 0:H] = ln2_b.reshape(H)
    return jnp.asarray(slab)


@jax.jit
def roberta_layer(hidden_states, attention_mask, param_slab):
    """hidden_states: (B,S,H); attention_mask: (B,1,S) additive; param_slab: (168,128)."""
    # Gridless single invocation: total footprint (~100 KB incl. padding) sits in
    # VMEM, so no pipeline prologue/epilogue, no per-step bookkeeping.
    # TODO(synk): if this layer is ever batched over many independent inputs on
    # v7x, add a leading "parallel" grid axis so both TensorCores are used.
    return pl.pallas_call(
        roberta_layer_kernel,
        out_shape=jax.ShapeDtypeStruct((B, S, H), hidden_states.dtype),
    )(hidden_states, attention_mask, param_slab)


# ------------------- pure-JAX reference (for verification) -------------------
def roberta_layer_ref(x, mask, params):
    (wq, bq, wk, bk, wv, bv, wo, bo, ln1_g, ln1_b,
     wi, bi, wo2, bo2, ln2_g, ln2_b) = params
    q = x @ wq + bq
    k = x @ wk + bk
    v = x @ wv + bv
    qh = q.reshape(B, S, NH, HD).transpose(0, 2, 1, 3)
    kh = k.reshape(B, S, NH, HD).transpose(0, 2, 1, 3)
    vh = v.reshape(B, S, NH, HD).transpose(0, 2, 1, 3)
    scores = jnp.einsum("bhqd,bhkd->bhqk", qh, kh) * SCALE
    scores = scores + mask[:, None, :, :]                 # (B,1,1,S) broadcast
    p = jax.nn.softmax(scores, axis=-1)
    ctx = jnp.einsum("bhqk,bhkd->bhqd", p, vh)
    ctx = ctx.transpose(0, 2, 1, 3).reshape(B, S, H)
    attn = ctx @ wo + bo
    attn_out = _layer_norm(attn + x, ln1_g, ln1_b)
    inter = _gelu(attn_out @ wi + bi)
    ffn = inter @ wo2 + bo2
    return _layer_norm(ffn + attn_out, ln2_g, ln2_b)


if __name__ == "__main__":
    key = jax.random.PRNGKey(0)
    ks = jax.random.split(key, 14)

    def w(k, shape, scale=0.02):
        return (scale * jax.random.normal(k, shape)).astype(jnp.float32)

    # nn.Linear weights, stored transposed as (in, out)
    wq, wk_, wv = w(ks[0], (H, H)), w(ks[1], (H, H)), w(ks[2], (H, H))
    wo = w(ks[3], (H, H))
    wi = w(ks[4], (H, I))
    wo2 = w(ks[5], (I, H))
    bq = w(ks[6], (1, H))
    bk = w(ks[7], (1, H))
    bv = w(ks[8], (1, H))
    bo = w(ks[9], (1, H))
    bi = w(ks[10], (1, I))
    bo2 = w(ks[11], (1, H))
    ln1_g = jnp.ones((1, H), jnp.float32)
    ln1_b = jnp.zeros((1, H), jnp.float32)
    ln2_g = jnp.ones((1, H), jnp.float32)
    ln2_b = jnp.zeros((1, H), jnp.float32)

    params = [wq, bq, wk_, bk, wv, bv, wo, bo, ln1_g, ln1_b,
              wi, bi, wo2, bo2, ln2_g, ln2_b]

    # one-time packing (amortized across all forward calls)
    param_slab = pack_params(params)

    hidden_states = jax.random.normal(ks[12], (B, S, H), jnp.float32)
    # additive attention mask: last two key positions of batch 1 masked out
    mask = np.zeros((B, 1, S), np.float32)
    mask[1, 0, -2:] = -10000.0
    attention_mask = jnp.asarray(mask)

    # TODO(synk): dropout layers are identity here (eval mode); training-mode
    # dropout / head_mask / cross-attention / past_key_value paths not modeled.

    out = roberta_layer(hidden_states, attention_mask, param_slab)
    out = jax.block_until_ready(out)

    ref = roberta_layer_ref(hidden_states, attention_mask, params)
    # tolerance slightly relaxed vs exact-division softmax because the kernel
    # uses the EUP approximate reciprocal for the softmax denominator.
    np.testing.assert_allclose(np.asarray(out), np.asarray(ref),
                               rtol=2e-3, atol=2e-3)
    print("KERNEL_OK")
</pallas_src>

<mosaic_0001>
module attributes {stable_mosaic.version = 11 : i64} {
  func.func @roberta_layer_kernel(%arg0: memref<2x8x32xf32, #tpu.memory_space<vmem>>, %arg1: memref<2x1x8xf32, #tpu.memory_space<vmem>>, %arg2: memref<168x128xf32, #tpu.memory_space<vmem>>, %arg3: memref<2x8x32xf32, #tpu.memory_space<vmem>>) attributes {dimension_semantics = [], scalar_prefetch = 0 : i64, scratch_operands = 0 : i64, tpu.core_type = #tpu.core_type<tc>} {
    %c0 = arith.constant 0 : index
    %c0_0 = arith.constant 0 : index
    %0 = vector.load %arg2[%c0, %c0_0] : memref<168x128xf32, #tpu.memory_space<vmem>>, vector<32x96xf32>
    %c32 = arith.constant 32 : index
    %c0_1 = arith.constant 0 : index
    %1 = vector.load %arg2[%c32, %c0_1] : memref<168x128xf32, #tpu.memory_space<vmem>>, vector<32x32xf32>
    %c64 = arith.constant 64 : index
    %c0_2 = arith.constant 0 : index
    %2 = vector.load %arg2[%c64, %c0_2] : memref<168x128xf32, #tpu.memory_space<vmem>>, vector<32x64xf32>
    %c96 = arith.constant 96 : index
    %c0_3 = arith.constant 0 : index
    %3 = vector.load %arg2[%c96, %c0_3] : memref<168x128xf32, #tpu.memory_space<vmem>>, vector<64x32xf32>
    %c160 = arith.constant 160 : index
    %c0_4 = arith.constant 0 : index
    %4 = vector.load %arg2[%c160, %c0_4] : memref<168x128xf32, #tpu.memory_space<vmem>>, vector<8x128xf32>
    %5 = vector.extract_strided_slice %4 {offsets = [0, 0], sizes = [1, 96], strides = [1, 1]} : vector<8x128xf32> to vector<1x96xf32>
    %6 = vector.extract_strided_slice %4 {offsets = [1, 0], sizes = [1, 32], strides = [1, 1]} : vector<8x128xf32> to vector<1x32xf32>
    %7 = vector.extract_strided_slice %4 {offsets = [2, 0], sizes = [1, 32], strides = [1, 1]} : vector<8x128xf32> to vector<1x32xf32>
    %8 = vector.extract_strided_slice %4 {offsets = [3, 0], sizes = [1, 32], strides = [1, 1]} : vector<8x128xf32> to vector<1x32xf32>
    %9 = vector.extract_strided_slice %4 {offsets = [4, 0], sizes = [1, 64], strides = [1, 1]} : vector<8x128xf32> to vector<1x64xf32>
    %10 = vector.extract_strided_slice %4 {offsets = [5, 0], sizes = [1, 32], strides = [1, 1]} : vector<8x128xf32> to vector<1x32xf32>
    %11 = vector.extract_strided_slice %4 {offsets = [6, 0], sizes = [1, 32], strides = [1, 1]} : vector<8x128xf32> to vector<1x32xf32>
    %12 = vector.extract_strided_slice %4 {offsets = [7, 0], sizes = [1, 32], strides = [1, 1]} : vector<8x128xf32> to vector<1x32xf32>
    %c0_5 = arith.constant 0 : index
    %c0_6 = arith.constant 0 : index
    %c0_7 = arith.constant 0 : index
    %13 = vector.load %arg0[%c0_5, %c0_6, %c0_7] : memref<2x8x32xf32, #tpu.memory_space<vmem>>, vector<2x8x32xf32>
    %c0_8 = arith.constant 0 : index
    %c0_9 = arith.constant 0 : index
    %c0_10 = arith.constant 0 : index
    %14 = vector.load %arg1[%c0_8, %c0_9, %c0_10] : memref<2x1x8xf32, #tpu.memory_space<vmem>>, vector<2x1x8xf32>
    %15 = vector.shape_cast %13 : vector<2x8x32xf32> to vector<16x32xf32>
    %cst = arith.constant dense<0.000000e+00> : vector<16x96xf32>
    %16 = tpu.matmul %15, %0, %cst {dimension_numbers = #tpu.dot_dimension_numbers<[1], [0], [0], [1], [0, 0, 1, 1], [], []>} : vector<16x32xf32>, vector<32x96xf32>, vector<16x96xf32> -> vector<16x96xf32>
    %17 = vector.broadcast %5 : vector<1x96xf32> to vector<16x96xf32>
    %18 = arith.addf %16, %17 : vector<16x96xf32>
    %19 = vector.extract_strided_slice %18 {offsets = [0, 0], sizes = [16, 8], strides = [1, 1]} : vector<16x96xf32> to vector<16x8xf32>
    %20 = vector.shape_cast %19 : vector<16x8xf32> to vector<2x8x8xf32>
    %21 = vector.extract_strided_slice %18 {offsets = [0, 32], sizes = [16, 8], strides = [1, 1]} : vector<16x96xf32> to vector<16x8xf32>
    %22 = vector.shape_cast %21 : vector<16x8xf32> to vector<2x8x8xf32>
    %23 = vector.extract_strided_slice %18 {offsets = [0, 64], sizes = [16, 8], strides = [1, 1]} : vector<16x96xf32> to vector<16x8xf32>
    %24 = vector.shape_cast %23 : vector<16x8xf32> to vector<2x8x8xf32>
    "tpu.trace_start"() <{level = 10 : i32, message = "bqd,bkd->bqk"}> : () -> ()
    %cst_11 = arith.constant dense<0.000000e+00> : vector<2x8x8xf32>
    %25 = tpu.matmul %20, %22, %cst_11 {dimension_numbers = #tpu.dot_dimension_numbers<[2], [2], [1], [1], [0, 0, 0, 1, 1, 1], [0], [0]>} : vector<2x8x8xf32>, vector<2x8x8xf32>, vector<2x8x8xf32> -> vector<2x8x8xf32>
    "tpu.trace_stop"() : () -> ()
    %26 = vector.broadcast %14 : vector<2x1x8xf32> to vector<2x8x8xf32>
    %27 = arith.addf %25, %26 : vector<2x8x8xf32>
    %cst_12 = arith.constant dense<0xFF800000> : vector<2x8xf32>
    %28 = vector.multi_reduction <maximumf>, %27, %cst_12 [2] : vector<2x8x8xf32> to vector<2x8xf32>
    %29 = vector.shape_cast %28 : vector<2x8xf32> to vector<2x8x1xf32>
    %30 = vector.broadcast %29 : vector<2x8x1xf32> to vector<2x8x8xf32>
    %31 = arith.subf %27, %30 : vector<2x8x8xf32>
    %32 = math.exp %31 : vector<2x8x8xf32>
    %cst_13 = arith.constant dense<0.000000e+00> : vector<2x8xf32>
    %33 = vector.multi_reduction <add>, %32, %cst_13 [2] : vector<2x8x8xf32> to vector<2x8xf32>
    %34 = vector.shape_cast %33 : vector<2x8xf32> to vector<2x8x1xf32>
    %35 = tpu.reciprocal %34 {approx = true} : vector<2x8x1xf32> -> vector<2x8x1xf32>
    %36 = vector.broadcast %35 : vector<2x8x1xf32> to vector<2x8x8xf32>
    %37 = arith.mulf %32, %36 : vector<2x8x8xf32>
    "tpu.trace_start"() <{level = 10 : i32, message = "bqk,bkd->bqd"}> : () -> ()
    %cst_14 = arith.constant dense<0.000000e+00> : vector<2x8x8xf32>
    %38 = tpu.matmul %37, %24, %cst_14 {dimension_numbers = #tpu.dot_dimension_numbers<[2], [1], [1], [2], [0, 0, 0, 1, 1, 2], [0], [0]>} : vector<2x8x8xf32>, vector<2x8x8xf32>, vector<2x8x8xf32> -> vector<2x8x8xf32>
    "tpu.trace_stop"() : () -> ()
    %39 = vector.extract_strided_slice %18 {offsets = [0, 8], sizes = [16, 8], strides = [1, 1]} : vector<16x96xf32> to vector<16x8xf32>
    %40 = vector.shape_cast %39 : vector<16x8xf32> to vector<2x8x8xf32>
    %41 = vector.extract_strided_slice %18 {offsets = [0, 40], sizes = [16, 8], strides = [1, 1]} : vector<16x96xf32> to vector<16x8xf32>
    %42 = vector.shape_cast %41 : vector<16x8xf32> to vector<2x8x8xf32>
    %43 = vector.extract_strided_slice %18 {offsets = [0, 72], sizes = [16, 8], strides = [1, 1]} : vector<16x96xf32> to vector<16x8xf32>
    %44 = vector.shape_cast %43 : vector<16x8xf32> to vector<2x8x8xf32>
    "tpu.trace_start"() <{level = 10 : i32, message = "bqd,bkd->bqk"}> : () -> ()
    %cst_15 = arith.constant dense<0.000000e+00> : vector<2x8x8xf32>
    %45 = tpu.matmul %40, %42, %cst_15 {dimension_numbers = #tpu.dot_dimension_numbers<[2], [2], [1], [1], [0, 0, 0, 1, 1, 1], [0], [0]>} : vector<2x8x8xf32>, vector<2x8x8xf32>, vector<2x8x8xf32> -> vector<2x8x8xf32>
    "tpu.trace_stop"() : () -> ()
    %46 = vector.broadcast %14 : vector<2x1x8xf32> to vector<2x8x8xf32>
    %47 = arith.addf %45, %46 : vector<2x8x8xf32>
    %cst_16 = arith.constant dense<0xFF800000> : vector<2x8xf32>
    %48 = vector.multi_reduction <maximumf>, %47, %cst_16 [2] : vector<2x8x8xf32> to vector<2x8xf32>
    %49 = vector.shape_cast %48 : vector<2x8xf32> to vector<2x8x1xf32>
    %50 = vector.broadcast %49 : vector<2x8x1xf32> to vector<2x8x8xf32>
    %51 = arith.subf %47, %50 : vector<2x8x8xf32>
    %52 = math.exp %51 : vector<2x8x8xf32>
    %cst_17 = arith.constant dense<0.000000e+00> : vector<2x8xf32>
    %53 = vector.multi_reduction <add>, %52, %cst_17 [2] : vector<2x8x8xf32> to vector<2x8xf32>
    %54 = vector.shape_cast %53 : vector<2x8xf32> to vector<2x8x1xf32>
    %55 = tpu.reciprocal %54 {approx = true} : vector<2x8x1xf32> -> vector<2x8x1xf32>
    %56 = vector.broadcast %55 : vector<2x8x1xf32> to vector<2x8x8xf32>
    %57 = arith.mulf %52, %56 : vector<2x8x8xf32>
    "tpu.trace_start"() <{level = 10 : i32, message = "bqk,bkd->bqd"}> : () -> ()
    %cst_18 = arith.constant dense<0.000000e+00> : vector<2x8x8xf32>
    %58 = tpu.matmul %57, %44, %cst_18 {dimension_numbers = #tpu.dot_dimension_numbers<[2], [1], [1], [2], [0, 0, 0, 1, 1, 2], [0], [0]>} : vector<2x8x8xf32>, vector<2x8x8xf32>, vector<2x8x8xf32> -> vector<2x8x8xf32>
    "tpu.trace_stop"() : () -> ()
    %59 = vector.extract_strided_slice %18 {offsets = [0, 16], sizes = [16, 8], strides = [1, 1]} : vector<16x96xf32> to vector<16x8xf32>
    %60 = vector.shape_cast %59 : vector<16x8xf32> to vector<2x8x8xf32>
    %61 = vector.extract_strided_slice %18 {offsets = [0, 48], sizes = [16, 8], strides = [1, 1]} : vector<16x96xf32> to vector<16x8xf32>
    %62 = vector.shape_cast %61 : vector<16x8xf32> to vector<2x8x8xf32>
    %63 = vector.extract_strided_slice %18 {offsets = [0, 80], sizes = [16, 8], strides = [1, 1]} : vector<16x96xf32> to vector<16x8xf32>
    %64 = vector.shape_cast %63 : vector<16x8xf32> to vector<2x8x8xf32>
    "tpu.trace_start"() <{level = 10 : i32, message = "bqd,bkd->bqk"}> : () -> ()
    %cst_19 = arith.constant dense<0.000000e+00> : vector<2x8x8xf32>
    %65 = tpu.matmul %60, %62, %cst_19 {dimension_numbers = #tpu.dot_dimension_numbers<[2], [2], [1], [1], [0, 0, 0, 1, 1, 1], [0], [0]>} : vector<2x8x8xf32>, vector<2x8x8xf32>, vector<2x8x8xf32> -> vector<2x8x8xf32>
    "tpu.trace_stop"() : () -> ()
    %66 = vector.broadcast %14 : vector<2x1x8xf32> to vector<2x8x8xf32>
    %67 = arith.addf %65, %66 : vector<2x8x8xf32>
    %cst_20 = arith.constant dense<0xFF800000> : vector<2x8xf32>
    %68 = vector.multi_reduction <maximumf>, %67, %cst_20 [2] : vector<2x8x8xf32> to vector<2x8xf32>
    %69 = vector.shape_cast %68 : vector<2x8xf32> to vector<2x8x1xf32>
    %70 = vector.broadcast %69 : vector<2x8x1xf32> to vector<2x8x8xf32>
    %71 = arith.subf %67, %70 : vector<2x8x8xf32>
    %72 = math.exp %71 : vector<2x8x8xf32>
    %cst_21 = arith.constant dense<0.000000e+00> : vector<2x8xf32>
    %73 = vector.multi_reduction <add>, %72, %cst_21 [2] : vector<2x8x8xf32> to vector<2x8xf32>
    %74 = vector.shape_cast %73 : vector<2x8xf32> to vector<2x8x1xf32>
    %75 = tpu.reciprocal %74 {approx = true} : vector<2x8x1xf32> -> vector<2x8x1xf32>
    %76 = vector.broadcast %75 : vector<2x8x1xf32> to vector<2x8x8xf32>
    %77 = arith.mulf %72, %76 : vector<2x8x8xf32>
    "tpu.trace_start"() <{level = 10 : i32, message = "bqk,bkd->bqd"}> : () -> ()
    %cst_22 = arith.constant dense<0.000000e+00> : vector<2x8x8xf32>
    %78 = tpu.matmul %77, %64, %cst_22 {dimension_numbers = #tpu.dot_dimension_numbers<[2], [1], [1], [2], [0, 0, 0, 1, 1, 2], [0], [0]>} : vector<2x8x8xf32>, vector<2x8x8xf32>, vector<2x8x8xf32> -> vector<2x8x8xf32>
    "tpu.trace_stop"() : () -> ()
    %79 = vector.extract_strided_slice %18 {offsets = [0, 24], sizes = [16, 8], strides = [1, 1]} : vector<16x96xf32> to vector<16x8xf32>
    %80 = vector.shape_cast %79 : vector<16x8xf32> to vector<2x8x8xf32>
    %81 = vector.extract_strided_slice %18 {offsets = [0, 56], sizes = [16, 8], strides = [1, 1]} : vector<16x96xf32> to vector<16x8xf32>
    %82 = vector.shape_cast %81 : vector<16x8xf32> to vector<2x8x8xf32>
    %83 = vector.extract_strided_slice %18 {offsets = [0, 88], sizes = [16, 8], strides = [1, 1]} : vector<16x96xf32> to vector<16x8xf32>
    %84 = vector.shape_cast %83 : vector<16x8xf32> to vector<2x8x8xf32>
    "tpu.trace_start"() <{level = 10 : i32, message = "bqd,bkd->bqk"}> : () -> ()
    %cst_23 = arith.constant dense<0.000000e+00> : vector<2x8x8xf32>
    %85 = tpu.matmul %80, %82, %cst_23 {dimension_numbers = #tpu.dot_dimension_numbers<[2], [2], [1], [1], [0, 0, 0, 1, 1, 1], [0], [0]>} : vector<2x8x8xf32>, vector<2x8x8xf32>, vector<2x8x8xf32> -> vector<2x8x8xf32>
    "tpu.trace_stop"() : () -> ()
    %86 = vector.broadcast %14 : vector<2x1x8xf32> to vector<2x8x8xf32>
    %87 = arith.addf %85, %86 : vector<2x8x8xf32>
    %cst_24 = arith.constant dense<0xFF800000> : vector<2x8xf32>
    %88 = vector.multi_reduction <maximumf>, %87, %cst_24 [2] : vector<2x8x8xf32> to vector<2x8xf32>
    %89 = vector.shape_cast %88 : vector<2x8xf32> to vector<2x8x1xf32>
    %90 = vector.broadcast %89 : vector<2x8x1xf32> to vector<2x8x8xf32>
    %91 = arith.subf %87, %90 : vector<2x8x8xf32>
    %92 = math.exp %91 : vector<2x8x8xf32>
    %cst_25 = arith.constant dense<0.000000e+00> : vector<2x8xf32>
    %93 = vector.multi_reduction <add>, %92, %cst_25 [2] : vector<2x8x8xf32> to vector<2x8xf32>
    %94 = vector.shape_cast %93 : vector<2x8xf32> to vector<2x8x1xf32>
    %95 = tpu.reciprocal %94 {approx = true} : vector<2x8x1xf32> -> vector<2x8x1xf32>
    %96 = vector.broadcast %95 : vector<2x8x1xf32> to vector<2x8x8xf32>
    %97 = arith.mulf %92, %96 : vector<2x8x8xf32>
    "tpu.trace_start"() <{level = 10 : i32, message = "bqk,bkd->bqd"}> : () -> ()
    %cst_26 = arith.constant dense<0.000000e+00> : vector<2x8x8xf32>
    %98 = tpu.matmul %97, %84, %cst_26 {dimension_numbers = #tpu.dot_dimension_numbers<[2], [1], [1], [2], [0, 0, 0, 1, 1, 2], [0], [0]>} : vector<2x8x8xf32>, vector<2x8x8xf32>, vector<2x8x8xf32> -> vector<2x8x8xf32>
    "tpu.trace_stop"() : () -> ()
    %99 = tpu.concatenate %38, %58, %78, %98 in 2 : vector<2x8x8xf32>, vector<2x8x8xf32>, vector<2x8x8xf32>, vector<2x8x8xf32> -> vector<2x8x32xf32>
    %100 = vector.shape_cast %99 : vector<2x8x32xf32> to vector<16x32xf32>
    %cst_27 = arith.constant dense<0.000000e+00> : vector<16x32xf32>
    %101 = tpu.matmul %100, %1, %cst_27 {dimension_numbers = #tpu.dot_dimension_numbers<[1], [0], [0], [1], [0, 0, 1, 1], [], []>} : vector<16x32xf32>, vector<32x32xf32>, vector<16x32xf32> -> vector<16x32xf32>
    %102 = vector.broadcast %6 : vector<1x32xf32> to vector<16x32xf32>
    %103 = arith.addf %101, %102 : vector<16x32xf32>
    %104 = arith.addf %103, %15 : vector<16x32xf32>
    %cst_28 = arith.constant dense<0.000000e+00> : vector<16xf32>
    %105 = vector.multi_reduction <add>, %104, %cst_28 [1] : vector<16x32xf32> to vector<16xf32>
    %106 = vector.shape_cast %105 : vector<16xf32> to vector<16x1xf32>
    %cst_29 = arith.constant 3.200000e+01 : f32
    %107 = vector.broadcast %cst_29 : f32 to vector<16x1xf32>
    %108 = arith.divf %106, %107 : vector<16x1xf32>
    %109 = vector.broadcast %108 : vector<16x1xf32> to vector<16x32xf32>
    %110 = arith.subf %104, %109 : vector<16x32xf32>
    %111 = arith.mulf %110, %110 : vector<16x32xf32>
    %cst_30 = arith.constant dense<0.000000e+00> : vector<16xf32>
    %112 = vector.multi_reduction <add>, %111, %cst_30 [1] : vector<16x32xf32> to vector<16xf32>
    %113 = vector.shape_cast %112 : vector<16xf32> to vector<16x1xf32>
    %cst_31 = arith.constant 3.200000e+01 : f32
    %114 = vector.broadcast %cst_31 : f32 to vector<16x1xf32>
    %115 = arith.divf %113, %114 : vector<16x1xf32>
    %116 = vector.broadcast %108 : vector<16x1xf32> to vector<16x32xf32>
    %117 = arith.subf %104, %116 : vector<16x32xf32>
    %cst_32 = arith.constant 9.99999996E-13 : f32
    %118 = vector.broadcast %cst_32 : f32 to vector<16x1xf32>
    %119 = arith.addf %115, %118 : vector<16x1xf32>
    %120 = math.rsqrt %119 : vector<16x1xf32>
    %121 = vector.broadcast %120 : vector<16x1xf32> to vector<16x32xf32>
    %122 = arith.mulf %117, %121 : vector<16x32xf32>
    %123 = vector.broadcast %7 : vector<1x32xf32> to vector<16x32xf32>
    %124 = arith.mulf %122, %123 : vector<16x32xf32>
    %125 = vector.broadcast %8 : vector<1x32xf32> to vector<16x32xf32>
    %126 = arith.addf %124, %125 : vector<16x32xf32>
    %cst_33 = arith.constant dense<0.000000e+00> : vector<16x64xf32>
    %127 = tpu.matmul %126, %2, %cst_33 {dimension_numbers = #tpu.dot_dimension_numbers<[1], [0], [0], [1], [0, 0, 1, 1], [], []>} : vector<16x32xf32>, vector<32x64xf32>, vector<16x64xf32> -> vector<16x64xf32>
    %128 = vector.broadcast %9 : vector<1x64xf32> to vector<16x64xf32>
    %129 = arith.addf %127, %128 : vector<16x64xf32>
    %cst_34 = arith.constant 5.000000e-01 : f32
    %130 = vector.broadcast %cst_34 : f32 to vector<16x64xf32>
    %131 = arith.mulf %129, %130 : vector<16x64xf32>
    %cst_35 = arith.constant 0.707106769 : f32
    %132 = vector.broadcast %cst_35 : f32 to vector<16x64xf32>
    %133 = arith.mulf %129, %132 : vector<16x64xf32>
    %134 = math.erf %133 : vector<16x64xf32>
    %cst_36 = arith.constant 1.000000e+00 : f32
    %135 = vector.broadcast %cst_36 : f32 to vector<16x64xf32>
    %136 = arith.addf %135, %134 : vector<16x64xf32>
    %137 = arith.mulf %131, %136 : vector<16x64xf32>
    %cst_37 = arith.constant dense<0.000000e+00> : vector<16x32xf32>
    %138 = tpu.matmul %137, %3, %cst_37 {dimension_numbers = #tpu.dot_dimension_numbers<[1], [0], [0], [1], [0, 0, 1, 1], [], []>} : vector<16x64xf32>, vector<64x32xf32>, vector<16x32xf32> -> vector<16x32xf32>
    %139 = vector.broadcast %10 : vector<1x32xf32> to vector<16x32xf32>
    %140 = arith.addf %138, %139 : vector<16x32xf32>
    %141 = arith.addf %140, %126 : vector<16x32xf32>
    %cst_38 = arith.constant dense<0.000000e+00> : vector<16xf32>
    %142 = vector.multi_reduction <add>, %141, %cst_38 [1] : vector<16x32xf32> to vector<16xf32>
    %143 = vector.shape_cast %142 : vector<16xf32> to vector<16x1xf32>
    %cst_39 = arith.constant 3.200000e+01 : f32
    %144 = vector.broadcast %cst_39 : f32 to vector<16x1xf32>
    %145 = arith.divf %143, %144 : vector<16x1xf32>
    %146 = vector.broadcast %145 : vector<16x1xf32> to vector<16x32xf32>
    %147 = arith.subf %141, %146 : vector<16x32xf32>
    %148 = arith.mulf %147, %147 : vector<16x32xf32>
    %cst_40 = arith.constant dense<0.000000e+00> : vector<16xf32>
    %149 = vector.multi_reduction <add>, %148, %cst_40 [1] : vector<16x32xf32> to vector<16xf32>
    %150 = vector.shape_cast %149 : vector<16xf32> to vector<16x1xf32>
    %cst_41 = arith.constant 3.200000e+01 : f32
    %151 = vector.broadcast %cst_41 : f32 to vector<16x1xf32>
    %152 = arith.divf %150, %151 : vector<16x1xf32>
    %153 = vector.broadcast %145 : vector<16x1xf32> to vector<16x32xf32>
    %154 = arith.subf %141, %153 : vector<16x32xf32>
    %cst_42 = arith.constant 9.99999996E-13 : f32
    %155 = vector.broadcast %cst_42 : f32 to vector<16x1xf32>
    %156 = arith.addf %152, %155 : vector<16x1xf32>
    %157 = math.rsqrt %156 : vector<16x1xf32>
    %158 = vector.broadcast %157 : vector<16x1xf32> to vector<16x32xf32>
    %159 = arith.mulf %154, %158 : vector<16x32xf32>
    %160 = vector.broadcast %11 : vector<1x32xf32> to vector<16x32xf32>
    %161 = arith.mulf %159, %160 : vector<16x32xf32>
    %162 = vector.broadcast %12 : vector<1x32xf32> to vector<16x32xf32>
    %163 = arith.addf %161, %162 : vector<16x32xf32>
    %164 = vector.shape_cast %163 : vector<16x32xf32> to vector<2x8x32xf32>
    %c0_43 = arith.constant 0 : index
    %c0_44 = arith.constant 0 : index
    %c0_45 = arith.constant 0 : index
    %165 = vector.load %arg3[%c0_43, %c0_44, %c0_45] : memref<2x8x32xf32, #tpu.memory_space<vmem>>, vector<2x8x32xf32>
    tpu.vector_store %arg3[%c0_43, %c0_44, %c0_45], %164 {strides = array<i32>} : memref<2x8x32xf32, #tpu.memory_space<vmem>>, vector<2x8x32xf32>,
    return
  }
}

</mosaic_0001>

<bundles_post_ra>
// kernel: roberta_layer.1
= control target key start
LH: loop header
LB: loop body
LE: loop exit
PB: predicated region body
PF: predicated region fallthrough
CT: control target
= control target key end

     0   :  { %8 = vsyncpa [#allocation3], 0  ;;  %s1426_s0 = inlined_call_operand.hbm [shape: f32[2,8,32], index: 0, kind: input, shape index: {}]   ;;  %s1427_s1 = inlined_call_operand.hbm [shape: f32[2,1,8], index: 1, kind: input, shape index: {}]   ;;  %s1428_s2 = inlined_call_operand.hbm [shape: f32[168,128], index: 2, kind: input, shape index: {}]   ;;  %s1429_s3 = inlined_call_operand.hbm [shape: f32[2,8,32], index: 3, kind: output, shape index: {}]  }
   0x1   :  { %9 = vsyncpa [#allocation6], 0  ;;  %s28_s14 = sshll.u32 %s1427_s1, 4  ;;  %s29_s14 = int_to_ptr.hbm [resolvable:$true] %s28_s14 }
   0x2   :  { %10 = vsyncpa [#allocation4], 0  ;;  %s1197_s15 = smov [#allocation5]   ;;  %s15_s19 = sshll.u32 %s1426_s0, 4  ;;  %s16_s19 = int_to_ptr.hbm [resolvable:$true] %s15_s19 }
   0x3   :  { %s30_s16 = sshll.u32 %s1197_s15, 4  ;;  %s1198_s20 = smov 16   ;;  %s31_s16 = int_to_ptr.vmem [resolvable:$true] %s30_s16 }
   0x4   :  { %s1199_s21 = smov 1   ;;  %s1200_s22 = smov [#allocation2]  }
   0x5   :  { %36 = dma.hbm_to_vmem [thread:$0]  %s29_s14, 32, %s31_s16, [#allocation6], %s1198_s20, %s1198_s20, %s1199_s21  }
   0x6   :  { %s17_s23 = sshll.u32 %s1200_s22, 4  ;;  %s1201_s24 = smov 128   ;;  %s18_s23 = int_to_ptr.vmem [resolvable:$true] %s17_s23 }
   0x7   :  { %s1202_s1 = smov 8   ;;  %s41_s27 = sshll.u32 %s1428_s2, 4  ;;  %s42_s27 = int_to_ptr.hbm [resolvable:$true] %s41_s27 }
   0x8   :  { %23 = dma.hbm_to_vmem [thread:$0]  %s16_s19, 256, %s18_s23, [#allocation3], %s1201_s24, %s1201_s24, %s1202_s1  }
   0x9   :  { %s1203_s0 = smov [#allocation7]  }
   0xa   :  { %s43_s28 = sshll.u32 %s1203_s0, 4  ;;  %s44_s28 = int_to_ptr.vmem [resolvable:$true] %s43_s28 }
   0xb   :  { %49 = dma.hbm_to_vmem [thread:$0]  %s42_s27, 2688, %s44_s28, [#allocation6], %s1201_s24, %s1201_s24, %s1202_s1  }
   0xc   :  { %1191 = dma.done.wait [#allocation3], 256  }
   0xd   :  { %1192 = vsyncadd [#allocation3], 4294967040 }
   0xe   :  { %1193 = dma.done.wait [#allocation6], 2720  }
   0xf   :  { %1194 = vsyncadd [#allocation6], 4294964576  ;;  %v65_v0 = vld [vmem:[#allocation7 + $0x18] sm:$0xff]  ;;  %v64_v1 = vld [vmem:[#allocation7 + $0x10] sm:$0xff]  ;;  %vm88_vm0 = vcmask 261120   ;;  %s1204_s2 = smov 64  }
  0x10   :  { %107 = vmatpush.msra.mxu0 %v65_v0  ;;  %v63_v2 = vld [vmem:[#allocation7 + $0x8] sm:$0xff]  ;;  %v62_v3 = vld [vmem:[#allocation7] sm:$0xff]  ;;  %v1259_v5 = vld [vmem:[#allocation2 + $0x8] sm:$0xff]  ;;  %s1205_s29 = smov 96   ;;  %s1206_s30 = smov 88   ;;  %vm127_vm1 = vcmask 64512  }
  0x11   :  { %v1255_v4 = vld [vmem:[#allocation2] sm:$0xff]  ;;  %v1263_v6 = vld [vmem:[#allocation7 + $0xa0] sm:$0xff]  ;;  %s1207_s4 = smov 120   ;;  %s1208_s5 = smov 72   ;;  %v1047_v23 = vld [vmem:[#allocation5] ss:$0 sm:$0xff] }
  0x12   :  { %108 = vmatpush.msra.mxu0 %v64_v1  ;;  %v87_v7 = vperm.slane %v1263_v6, 0  ;;  %s1209_s6 = smov 80   ;;  %s1210_s7 = smov 112   ;;  %v1048_v27 = vld [vmem:[#allocation5 + $0x1] ss:$0 sm:$0xff]  ;;  %vm669_vm2 = vcmask 130048  }
  0x13   :  { %s1211_s8 = smov 104   ;;  %s1212_s9 = smov 56   ;;  %vm672_vm3 = vcmask 195584   ;;  %vm883_vm15 = vcmask 523264  }
  0x14   :  { %109 = vmatpush.msra.mxu0 %v63_v2  ;;  %s1213_s10 = smov 40   ;;  %s1214_s11 = smov 48  }
  0x15   :  { %s1215_s12 = smov 24   ;;  %s1217_s13 = smov [#allocation8]  }
  0x16   :  { %110 = vmatpush.msra.mxu0 %v62_v3  ;;  %s971_s14 = sshll.u32 %s1217_s13, 4  ;;  %s973_s17 = sshll.u32 %s1429_s3, 4  ;;  %s972_s14 = int_to_ptr.vmem [resolvable:$true] %s971_s14  ;;  %s974_s17 = int_to_ptr.hbm [resolvable:$true] %s973_s17 }
  0x17   :  { %987 = vmatmul.msk.f32.vlgmr.msra.gmra.mxu0 %vm88_vm0, %v1255_v4 }
  0x1f   :  { %988 = vmatmul.msk.f32.gmra.mxu0 %vm88_vm0, %v1259_v5 }
  0x94   :  { %v112_v8 = vpop.f32.mrf.mxu0 }
  0x95   :  { %v1266_v9 = vadd.f32 %v112_v8, %v87_v7 }
  0x97   :  { %201 = vrot.lane.b32.xlu2 %v1266_v9, %s1204_s2  ;;  %125 = vrot.lane.b32.xlu0 %v1266_v9, %s1205_s29 }
  0x9c   :  { %v115_v10 = vpop.f32.mrf.mxu0 }
  0x9d   :  { %v1271_v11 = vadd.f32 %v115_v10, %v87_v7 }
  0x9f   :  { %153 = vrot.lane.b32.xlu1 %v1271_v11, %s1205_s29  ;;  %283 = vrot.lane.b32.xlu2 %v1271_v11, %s1206_s30 }
  0xa7   :  { %253 = vrot.lane.b32.xlu1 %v1266_v9, %s1207_s4  ;;  %281 = vrot.lane.b32.xlu2 %v1271_v11, %s1207_s4 }
  0xaf   :  { %515 = vrot.lane.b32.xlu1 %v1266_v9, %s1208_s5  ;;  %255 = vrot.lane.b32.xlu2 %v1266_v9, %s1206_s30 }
  0xb7   :  { %385 = vrot.lane.b32.xlu2 %v1266_v9, %s1209_s6 }
  0xbf   :  { %383 = vrot.lane.b32.xlu2 %v1266_v9, %s1210_s7 }
  0xc7   :  { %513 = vrot.lane.b32.xlu2 %v1266_v9, %s1211_s8 }
  0xcf   :  { %543 = vrot.lane.b32.xlu2 %v1271_v11, %s1208_s5 }
  0xf1   :  { %v202_v12 = vpop.permute.xlu2 %201 }
  0xf9   :  { %v284_v13 = vpop.permute.xlu2 %283 }
 0x101   :  { %v282_v14 = vpop.permute.xlu2 %281 }
 0x109   :  { %v126_v15 = vpop.permute.xlu0 %125  ;;  %v256_v16 = vpop.permute.xlu2 %255 }
 0x10a   :  { %989 = vmatpush.xpose.msk.msra.mxu1 %vm127_vm1, %v126_v15 }
 0x10d   :  { %990 = vmatmul.msk.f32.vlgmr.msra.gmra.mxu1 %vm127_vm1, %v1266_v9 }
 0x10e   :  { %222 = vmatpush.msrb.mxu1 %v202_v12 }
 0x110   :  { %995 = vmatpush.xpose.msk.msra.mxu1 %vm127_vm1, %v256_v16 }
 0x111   :  { %v154_v17 = vpop.permute.xlu1 %153  ;;  %v386_v18 = vpop.permute.xlu2 %385 }
 0x112   :  { %991 = vmatpush.xpose.msk.msra.mxu2 %vm127_vm1, %v154_v17  ;;  %v1042_v17 = vpack.i.bf16 %v1271_v11, %v1266_v9 }
 0x115   :  { %992 = vmatmul.msk.f32.vlgmr.msra.gmra.mxu2 %vm127_vm1, %v1271_v11 }
 0x116   :  { %997 = vmatpush.xpose.msk.msrb.mxu2 %vm127_vm1, %v284_v13 }
 0x119   :  { %v254_v19 = vpop.permute.xlu1 %253  ;;  %v384_v21 = vpop.permute.xlu2 %383 }
 0x11a   :  { %1001 = vmatpush.xpose.msk.msra.mxu2 %vm127_vm1, %v386_v18 }
 0x11d   :  { %998 = vmatmul.msk.f32.vlgmr.msrb.gmra.mxu2 %vm127_vm1, %v282_v14 }
 0x121   :  { %v516_v20 = vpop.permute.xlu1 %515  ;;  %v514_v22 = vpop.permute.xlu2 %513 }
 0x122   :  { %1007 = vmatpush.xpose.msk.msrb.mxu2 %vm127_vm1, %v516_v20 }
 0x125   :  { %1002 = vmatmul.msk.f32.vlgmr.msra.gmra.mxu2 %vm127_vm1, %v384_v21 }
 0x129   :  { %v544_v46 = vpop.permute.xlu2 %543 }
 0x12d   :  { %1008 = vmatmul.msk.f32.vlgmr.msrb.gmra.mxu2 %vm127_vm1, %v514_v22 }
 0x18a   :  { %v149_v24 = vpop.f32.mrf.mxu1 }
 0x18b   :  { %v150_v25 = vadd.f32 %v1047_v23, %v149_v24 }
 0x18d   :  { %v179_v26 = vsel %vm127_vm1, %v150_v25, -inf }
 0x18e   :  { %180 = vmax.xlane.f32.xlu0 %v179_v26 }
 0x198   :  { %v176_v28 = vpop.f32.mrf.mxu2 }
 0x199   :  { %v177_v29 = vadd.f32 %v1048_v27, %v176_v28 }
 0x19b   :  { %v182_v30 = vsel %vm127_vm1, %v177_v29, -inf }
 0x19c   :  { %183 = vmax.xlane.f32.xlu2 %v182_v30 }
 0x1a0   :  { %v306_v31 = vpop.f32.mrf.mxu2 }
 0x1a1   :  { %v307_v40 = vadd.f32 %v1048_v27, %v306_v31 }
 0x1a2   :  { %411 = vrot.lane.b32.xlu0 %v1271_v11, %s1210_s7 }
 0x1a3   :  { %v312_v41 = vsel %vm127_vm1, %v307_v40, -inf }
 0x1a4   :  { %313 = vmax.xlane.f32.xlu2 %v312_v41 }
 0x1a8   :  { %v408_v32 = vpop.f32.mrf.mxu2 }
 0x1a9   :  { %v409_v33 = vadd.f32 %v1047_v23, %v408_v32 }
 0x1ab   :  { %v439_v34 = vsel %vm127_vm1, %v409_v33, -inf }
 0x1b0   :  { %v538_v55 = vpop.f32.mrf.mxu2 }
 0x1b1   :  { %v539_v57 = vadd.f32 %v1047_v23, %v538_v55 }
 0x1b3   :  { %v569_v62 = vsel %vm127_vm1, %v539_v57, -inf }
 0x1cc   :  { %440 = vmax.xlane.f32.xlu0 %v439_v34 }
 0x201   :  { %v181_v35 = vpop.xlane.xlu0 %180 }
 0x202   :  { %v185_v36 = vsub.f32 %v150_v25, %v181_v35 }
 0x204   :  { %v187_v37 = vmul.f32 1.442695, %v185_v36 }
 0x206   :  { %1049 = vpow2.f32 %v187_v37 }
 0x20c   :  { %v1050_v38 = vpop.eup %1049 }
 0x20d   :  { %v191_v39 = vsel %vm127_vm1, %v1050_v38, 0.0 }
 0x20e   :  { %192 = vadd.xlane.f32.xlu1 %v191_v39 }
 0x20f   :  { %v184_v50 = vpop.xlane.xlu2 %183 }
 0x210   :  { %v186_v53 = vsub.f32 %v177_v29, %v184_v50 }
 0x212   :  { %v189_v56 = vmul.f32 1.442695, %v186_v53 }
 0x214   :  { %v412_v47 = vpop.permute.xlu0 %411 }
 0x217   :  { %v314_v1 = vpop.xlane.xlu2 %313 }
 0x218   :  { %v316_v3 = vsub.f32 %v307_v40, %v314_v1 }
 0x21a   :  { %v319_v13 = vmul.f32 1.442695, %v316_v3 }
 0x227   :  { %413 = vrot.lane.b32.xlu1 %v1271_v11, %s1209_s6 }
 0x22f   :  { %541 = vrot.lane.b32.xlu1 %v1271_v11, %s1211_s8 }
 0x23f   :  { %v441_v58 = vpop.xlane.xlu0 %440 }
 0x240   :  { %v445_v59 = vsub.f32 %v409_v33, %v441_v58 }
 0x242   :  { %v447_v0 = vmul.f32 1.442695, %v445_v59 }
 0x281   :  { %v193_v42 = vpop.xlane.xlu1 %192 }
 0x282   :  { %1051 = vrcp.f32 %v193_v42 }
 0x283   :  { %1053 = vpow2.f32 %v189_v56 }
 0x284   :  { %1055 = vpow2.f32 %v447_v0 }
 0x285   :  { %1057 = vpow2.f32 %v319_v13 }
 0x288   :  { %v1052_v43 = vpop.eup %1051 }
 0x289   :  { %v199_v44 = vmul.f32 %v1052_v43, %v1050_v38  ;;  %v1054_v2 = vpop.eup %1053 }
 0x28a   :  { %v194_v10 = vsel %vm127_vm1, %v1054_v2, 0.0  ;;  %v1323_v14 = vpop.eup %1055 }
 0x28b   :  { %993 = vmatmul.msk.f32.vlgmr.msrb.gmra.mxu1 %vm127_vm1, %v199_v44  ;;  %v451_v15 = vsel %vm127_vm1, %v1323_v14, 0.0  ;;  %v1058_v16 = vpop.eup %1057 }
 0x28c   :  { %v324_v18 = vsel %vm127_vm1, %v1058_v16, 0.0 }
 0x293   :  { %996 = vmatmul.msk.f32.vlgmr.msra.gmra.mxu1 %vm127_vm1, %v254_v19 }
 0x299   :  { %v414_v45 = vpop.permute.xlu1 %413 }
 0x29a   :  { %1003 = vmatpush.xpose.msk.msrb.mxu0 %vm127_vm1, %v414_v45 }
 0x29d   :  { %1004 = vmatmul.msk.f32.vlgmr.msrb.gmra.mxu0 %vm127_vm1, %v412_v47 }
 0x29e   :  { %1009 = vmatpush.xpose.msk.msra.mxu0 %vm127_vm1, %v544_v46 }
 0x2a1   :  { %v542_v48 = vpop.permute.xlu1 %541 }
 0x2a5   :  { %1010 = vmatmul.msk.f32.vlgmr.msra.gmra.mxu0 %vm127_vm1, %v542_v48 }
 0x308   :  { %v1316_v49 = vpop.f32.mrf.mxu1 }
 0x310   :  { %v278_v51 = vpop.f32.mrf.mxu1 }
 0x311   :  { %v279_v52 = vadd.f32 %v1047_v23, %v278_v51 }
 0x313   :  { %v309_v54 = vsel %vm127_vm1, %v279_v52, -inf }
 0x314   :  { %310 = vmax.xlane.f32.xlu1 %v309_v54 }
 0x31a   :  { %v436_v60 = vpop.f32.mrf.mxu0 }
 0x31b   :  { %v437_v61 = vadd.f32 %v1048_v27, %v436_v60 }
 0x31c   :  { %570 = vmax.xlane.f32.xlu1 %v569_v62 }
 0x31d   :  { %v442_v63 = vsel %vm127_vm1, %v437_v61, -inf }
 0x31e   :  { %443 = vmax.xlane.f32.xlu0 %v442_v63 }
 0x322   :  { %v566_v7 = vpop.f32.mrf.mxu0 }
 0x323   :  { %v567_v8 = vadd.f32 %v1048_v27, %v566_v7 }
 0x324   :  { %195 = vadd.xlane.f32.xlu1 %v194_v10 }
 0x325   :  { %v572_v12 = vsel %vm127_vm1, %v567_v8, -inf }
 0x326   :  { %573 = vmax.xlane.f32.xlu2 %v572_v12 }
 0x32c   :  { %452 = vadd.xlane.f32.xlu1 %v451_v15  ;;  %v69_v15 = vld [vmem:[#allocation7 + $0x38] sm:$0xff] }
 0x32d   :  { %694 = vmatpush.msra.mxu2 %v69_v15 }
 0x332   :  { %1043 = vrot.lane.b32.xlu0 %v1042_v17, %s1212_s9  ;;  %v67_v17 = vld [vmem:[#allocation7 + $0x28] sm:$0xff] }
 0x334   :  { %325 = vadd.xlane.f32.xlu1 %v324_v18  ;;  %v66_v18 = vld [vmem:[#allocation7 + $0x20] sm:$0xff] }
 0x33a   :  { %591 = vrot.lane.b32.xlu0 %v1266_v9, %s1213_s10 }
 0x33e   :  { %227 = vrot.lane.b32.xlu2 %v1271_v11, %s1204_s2 }
 0x346   :  { %461 = vrot.lane.b32.xlu2 %v1266_v9, %s1214_s11 }
 0x387   :  { %v311_v19 = vpop.xlane.xlu1 %310 }
 0x388   :  { %v315_v20 = vsub.f32 %v279_v52, %v311_v19 }
 0x38a   :  { %v317_v21 = vmul.f32 1.442695, %v315_v20 }
 0x38c   :  { %1059 = vpow2.f32 %v317_v21 }
 0x38f   :  { %v571_v22 = vpop.xlane.xlu1 %570 }
 0x390   :  { %v575_v23 = vsub.f32 %v539_v57, %v571_v22 }
 0x391   :  { %v444_v24 = vpop.xlane.xlu0 %443 }
 0x392   :  { %v1060_v25 = vpop.eup %1059  ;;  %v577_v26 = vmul.f32 1.442695, %v575_v23  ;;  %v446_v27 = vsub.f32 %v437_v61, %v444_v24 }
 0x393   :  { %v321_v28 = vsel %vm127_vm1, %v1060_v25, 0.0 }
 0x394   :  { %1061 = vpow2.f32 %v577_v26  ;;  %322 = vadd.xlane.f32.xlu0 %v321_v28  ;;  %v449_v29 = vmul.f32 1.442695, %v446_v27 }
 0x397   :  { %v196_v30 = vpop.xlane.xlu1 %195 }
 0x398   :  { %1063 = vrcp.f32 %v196_v30 }
 0x399   :  { %v574_v31 = vpop.xlane.xlu2 %573  ;;  %1065 = vpow2.f32 %v449_v29 }
 0x39a   :  { %v1062_v32 = vpop.eup %1061  ;;  %v576_v9 = vsub.f32 %v567_v8, %v574_v31  ;;  %v675_v31 = vperm.slane %v1263_v6, 1 }
 0x39b   :  { %v581_v33 = vsel %vm127_vm1, %v1062_v32, 0.0 }
 0x39c   :  { %v579_v34 = vmul.f32 1.442695, %v576_v9  ;;  %582 = vadd.xlane.f32.xlu1 %v581_v33 }
 0x39e   :  { %v1064_v35 = vpop.eup %1063  ;;  %1067 = vpow2.f32 %v579_v34 }
 0x39f   :  { %v453_v36 = vpop.xlane.xlu1 %452  ;;  %v1066_v37 = vpop.eup %1065  ;;  %v200_v39 = vmul.f32 %v1064_v35, %v1054_v2 }
 0x3a0   :  { %v454_v40 = vsel %vm127_vm1, %v1066_v37, 0.0 }
 0x3a1   :  { %v228_v38 = vpop.permute.xlu2 %227 }
 0x3a2   :  { %248 = vmatpush.msra.mxu3 %v228_v38  ;;  %v1216_v38 = vmov 32.0  }
 0x3a3   :  { %994 = vmatmul.msk.f32.vlgmr.msra.gmra.mxu3 %vm127_vm1, %v200_v39 }
 0x3a4   :  { %v1068_v41 = vpop.eup %1067  ;;  %455 = vadd.xlane.f32.xlu1 %v454_v40  ;;  %v1044_v42 = vpop.permute.xlu0 %1043 }
 0x3a5   :  { %v1046_v43 = vunpack.i.h.bf16 %v1044_v42  ;;  %v584_v44 = vsel %vm127_vm1, %v1068_v41, 0.0  ;;  %v1045_v45 = vunpack.i.l.bf16 %v1044_v42 }
 0x3a6   :  { %585 = vadd.xlane.f32.xlu2 %v584_v44 }
 0x3a7   :  { %v326_v46 = vpop.xlane.xlu1 %325  ;;  %352 = vmatpush.msrb.mxu3 %v1045_v45  ;;  %378 = vmatpush.msrb.mxu1 %v1046_v43 }
 0x3a8   :  { %1069 = vrcp.f32 %v326_v46  ;;  %617 = vrot.lane.b32.xlu0 %v1271_v11, %s1213_s10 }
 0x3a9   :  { %v462_v47 = vpop.permute.xlu2 %461 }
 0x3aa   :  { %482 = vmatpush.msra.mxu3 %v462_v47 }
 0x3ac   :  { %v592_v51 = vpop.permute.xlu0 %591 }
 0x3ae   :  { %v1070_v48 = vpop.eup %1069 }
 0x3af   :  { %v330_v50 = vmul.f32 %v1070_v48, %v1058_v16  ;;  %v68_v16 = vld [vmem:[#allocation7 + $0x30] sm:$0xff] }
 0x3b0   :  { %695 = vmatpush.msra.mxu2 %v68_v16 }
 0x3b1   :  { %1000 = vmatmul.msk.f32.vlgmr.msrb.gmra.mxu1 %vm127_vm1, %v330_v50 }
 0x3b2   :  { %696 = vmatpush.msra.mxu2 %v67_v17 }
 0x3b4   :  { %697 = vmatpush.msra.mxu2 %v66_v18 }
 0x3bd   :  { %487 = vrot.lane.b32.xlu1 %v1271_v11, %s1214_s11 }
 0x407   :  { %v323_v52 = vpop.xlane.xlu0 %322 }
 0x408   :  { %1071 = vrcp.f32 %v323_v52 }
 0x409   :  { %1073 = vrcp.f32 %v453_v36 }
 0x40e   :  { %v1072_v53 = vpop.eup %1071 }
 0x40f   :  { %v329_v54 = vmul.f32 %v1072_v53, %v1060_v25  ;;  %v583_v55 = vpop.xlane.xlu1 %582  ;;  %v1074_v56 = vpop.eup %1073 }
 0x410   :  { %1075 = vrcp.f32 %v583_v55  ;;  %v459_v57 = vmul.f32 %v1074_v56, %v1323_v14  ;;  %v72_v55 = vld [vmem:[#allocation7 + $0x50] sm:$0xff]  ;;  %v71_v56 = vld [vmem:[#allocation7 + $0x48] sm:$0xff] }
 0x411   :  { %999 = vmatmul.msk.f32.vlgmr.msrb.gmra.mxu3 %vm127_vm1, %v329_v54  ;;  %v73_v54 = vld [vmem:[#allocation7 + $0x58] sm:$0xff] }
 0x412   :  { %612 = vmatpush.msrb.mxu3 %v592_v51  ;;  %783 = vmatpush.msrb.mxu0 %v73_v54 }
 0x414   :  { %784 = vmatpush.msrb.mxu0 %v72_v55 }
 0x416   :  { %v1076_v58 = vpop.eup %1075  ;;  %785 = vmatpush.msrb.mxu0 %v71_v56 }
 0x417   :  { %v589_v59 = vmul.f32 %v1076_v58, %v1062_v32  ;;  %v456_v11 = vpop.xlane.xlu1 %455 }
 0x418   :  { %1077 = vrcp.f32 %v456_v11 }
 0x419   :  { %1005 = vmatmul.msk.f32.vlgmr.msra.gmra.mxu3 %vm127_vm1, %v459_v57  ;;  %v586_v60 = vpop.xlane.xlu2 %585  ;;  %v70_v57 = vld [vmem:[#allocation7 + $0x40] sm:$0xff] }
 0x41a   :  { %1079 = vrcp.f32 %v586_v60  ;;  %v618_v1 = vpop.permute.xlu0 %617  ;;  %786 = vmatpush.msrb.mxu0 %v70_v57 }
 0x41b   :  { %1081 = vrcp.f32 %v1216_v38 }
 0x41e   :  { %v1078_v61 = vpop.eup %1077 }
 0x41f   :  { %v460_v63 = vmul.f32 %v1078_v61, %v1066_v37 }
 0x420   :  { %v1080_v2 = vpop.eup %1079 }
 0x421   :  { %1011 = vmatmul.msk.f32.vlgmr.msrb.gmra.mxu3 %vm127_vm1, %v589_v59  ;;  %v590_v3 = vmul.f32 %v1080_v2, %v1068_v41  ;;  %v1082_v39 = vpop.eup %1081 }
 0x422   :  { %v714_v40 = vmul.f32 32.0, %v1082_v39  ;;  %vm718_vm4 = vweird.f32 %v1082_v39 }
 0x424   :  { %v715_v41 = vsub.f32 1.0, %v714_v40 }
 0x426   :  { %v250_v7 = vpop.f32.mrf.mxu3  ;;  %v716_v42 = vmul.f32 %v1082_v39, %v715_v41 }
 0x428   :  { %v717_v43 = vadd.f32 %v1082_v39, %v716_v42  ;;  %v77_v42 = vld [vmem:[#allocation7 + $0x78] sm:$0xff] }
 0x42a   :  { %v1366_v44 = vsel %vm718_vm4, %v1082_v39, %v717_v43  ;;  %v78_v39 = vld [vmem:[#allocation7 + $0x80] sm:$0xff] }
 0x42e   :  { %v380_v62 = vpop.f32.mrf.mxu1 }
 0x42f   :  { %v488_v0 = vpop.permute.xlu1 %487  ;;  %647 = vrot.lane.b32.xlu1 %v380_v62, %s1202_s1 }
 0x430   :  { %508 = vmatpush.msra.mxu1 %v488_v0 }
 0x431   :  { %1006 = vmatmul.msk.f32.vlgmr.msra.gmra.mxu1 %vm127_vm1, %v460_v63 }
 0x432   :  { %638 = vmatpush.msrb.mxu1 %v618_v1 }
 0x439   :  { %1012 = vmatmul.msk.f32.vlgmr.msrb.gmra.mxu1 %vm127_vm1, %v590_v3 }
 0x494   :  { %v354_v8 = vpop.f32.mrf.mxu3 }
 0x495   :  { %645 = vrot.lane.b32.xlu0 %v354_v8, %s1202_s1 }
 0x49c   :  { %v484_v10 = vpop.f32.mrf.mxu3 }
 0x49d   :  { %653 = vrot.lane.b32.xlu0 %v484_v10, %s1198_s20 }
 0x4a1   :  { %v648_v25 = vpop.permute.xlu1 %647 }
 0x4a2   :  { %v668_v27 = vsel %vm127_vm1, %v250_v7, %v648_v25  ;;  %v758_v7 = vperm.slane %v1263_v6, 2 }
 0x4a4   :  { %v614_v12 = vpop.f32.mrf.mxu3 }
 0x4a5   :  { %661 = vrot.lane.b32.xlu0 %v614_v12, %s1215_s12 }
 0x4ae   :  { %v510_v13 = vpop.f32.mrf.mxu1 }
 0x4af   :  { %655 = vrot.lane.b32.xlu0 %v510_v13, %s1198_s20  ;;  %v761_v13 = vperm.slane %v1263_v6, 3 }
 0x4b6   :  { %v640_v14 = vpop.f32.mrf.mxu1 }
 0x4b7   :  { %663 = vrot.lane.b32.xlu1 %v640_v14, %s1215_s12 }
 0x507   :  { %v646_v19 = vpop.permute.xlu0 %645 }
 0x508   :  { %v667_v21 = vsel %vm127_vm1, %v1316_v49, %v646_v19 }
 0x50f   :  { %v654_v20 = vpop.permute.xlu0 %653 }
 0x510   :  { %v670_v22 = vsel %vm669_vm2, %v667_v21, %v654_v20 }
 0x517   :  { %v662_v23 = vpop.permute.xlu0 %661 }
 0x518   :  { %v673_v24 = vsel %vm672_vm3, %v670_v22, %v662_v23 }
 0x519   :  { %1013 = vmatmul.msk.f32.vlgmr.msra.gmra.mxu2 %vm88_vm0, %v673_v24 }
 0x521   :  { %v656_v26 = vpop.permute.xlu0 %655 }
 0x522   :  { %v671_v28 = vsel %vm669_vm2, %v668_v27, %v656_v26  ;;  %v764_v26 = vperm.slane %v1263_v6, 4 }
 0x529   :  { %v664_v29 = vpop.permute.xlu1 %663 }
 0x52a   :  { %v674_v30 = vsel %vm672_vm3, %v671_v28, %v664_v29 }
 0x52b   :  { %1014 = vmatmul.msk.f32.gmra.mxu2 %vm88_vm0, %v674_v30 }
 0x59c   :  { %v699_v32 = vpop.f32.mrf.mxu2 }
 0x59d   :  { %v700_v9 = vadd.f32 %v699_v32, %v675_v31  ;;  %v81_v32 = vld [vmem:[#allocation7 + $0x98] sm:$0xff] }
 0x59e   :  { %898 = vmatpush.msra.mxu3 %v81_v32 }
 0x59f   :  { %v705_v49 = vadd.f32 %v700_v9, %v1255_v4 }
 0x5a1   :  { %v707_v33 = vsel %vm88_vm0, %v705_v49, 0.0 }
 0x5a2   :  { %708 = vadd.xlane.f32.xlu2 %v707_v33  ;;  %v80_v33 = vld [vmem:[#allocation7 + $0x90] sm:$0xff] }
 0x5a3   :  { %899 = vmatpush.msra.mxu3 %v80_v33 }
 0x5ae   :  { %v702_v34 = vpop.f32.mrf.mxu2 }
 0x5af   :  { %v703_v35 = vadd.f32 %v702_v34, %v675_v31 }
 0x5b1   :  { %v706_v36 = vadd.f32 %v703_v35, %v1259_v5 }
 0x5b3   :  { %v710_v37 = vsel %vm88_vm0, %v706_v36, 0.0 }
 0x5b4   :  { %711 = vadd.xlane.f32.xlu0 %v710_v37 }
 0x615   :  { %v709_v4 = vpop.xlane.xlu2 %708 }
 0x616   :  { %v720_v45 = vmul.f32 %v1366_v44, %v709_v4 }
 0x618   :  { %v722_v46 = vsub.f32 %v705_v49, %v720_v45  ;;  %v76_v45 = vld [vmem:[#allocation7 + $0x70] sm:$0xff] }
 0x61a   :  { %v724_v47 = vmul.f32 %v722_v46, %v722_v46 }
 0x61c   :  { %v726_v5 = vsel %vm88_vm0, %v724_v47, 0.0 }
 0x61d   :  { %727 = vadd.xlane.f32.xlu1 %v726_v5 }
 0x627   :  { %v712_v48 = vpop.xlane.xlu0 %711 }
 0x628   :  { %v721_v50 = vmul.f32 %v1366_v44, %v712_v48  ;;  %v75_v48 = vld [vmem:[#allocation7 + $0x68] sm:$0xff] }
 0x62a   :  { %v723_v51 = vsub.f32 %v706_v36, %v721_v50  ;;  %v79_v36 = vld [vmem:[#allocation7 + $0x88] sm:$0xff] }
 0x62b   :  { %900 = vmatpush.msra.mxu3 %v79_v36 }
 0x62c   :  { %v725_v52 = vmul.f32 %v723_v51, %v723_v51 }
 0x62d   :  { %901 = vmatpush.msra.mxu3 %v78_v39 }
 0x62e   :  { %v729_v53 = vsel %vm88_vm0, %v725_v52, 0.0  ;;  %v74_v52 = vld [vmem:[#allocation7 + $0x60] sm:$0xff] }
 0x62f   :  { %730 = vadd.xlane.f32.xlu2 %v729_v53  ;;  %902 = vmatpush.msra.mxu3 %v77_v42 }
 0x631   :  { %903 = vmatpush.msra.mxu3 %v76_v45 }
 0x633   :  { %904 = vmatpush.msra.mxu3 %v75_v48 }
 0x635   :  { %905 = vmatpush.msra.mxu3 %v74_v52 }
 0x690   :  { %v728_v58 = vpop.xlane.xlu1 %727 }
 0x691   :  { %v732_v59 = vmul.f32 %v728_v58, %v1366_v44 }
 0x693   :  { %v734_v11 = vadd.f32 1e-12, %v732_v59 }
 0x695   :  { %1083 = vrsqrt.f32 %v734_v11  ;;  %vm742_vm6 = vweird.f32 %v734_v11 }
 0x69b   :  { %v1084_v60 = vpop.eup %1083 }
 0x69c   :  { %v737_v61 = vmul.f32 %v1084_v60, %v734_v11  ;;  %vm743_vm5 = vweird.f32 %v1084_v60 }
 0x69d   :  { %vm744_vm7 = vmor %vm742_vm6, %vm743_vm5 }
 0x69e   :  { %v738_v62 = vmul.f32 %v1084_v60, %v737_v61 }
 0x6a0   :  { %v739_v63 = vmul.f32 0.5, %v738_v62 }
 0x6a2   :  { %v740_v0 = vsub.f32 1.5, %v739_v63  ;;  %v731_v1 = vpop.xlane.xlu2 %730 }
 0x6a3   :  { %v733_v2 = vmul.f32 %v731_v1, %v1366_v44 }
 0x6a4   :  { %v741_v3 = vmul.f32 %v1084_v60, %v740_v0 }
 0x6a5   :  { %v735_v8 = vadd.f32 1e-12, %v733_v2 }
 0x6a6   :  { %v745_v10 = vsel %vm744_vm7, %v1084_v60, %v741_v3 }
 0x6a7   :  { %v756_v12 = vmul.f32 %v745_v10, %v722_v46  ;;  %1085 = vrsqrt.f32 %v735_v8  ;;  %vm752_vm9 = vweird.f32 %v735_v8 }
 0x6a9   :  { %v759_v14 = vmul.f32 %v758_v7, %v756_v12 }
 0x6ab   :  { %v1376_v15 = vadd.f32 %v761_v13, %v759_v14 }
 0x6ad   :  { %v1086_v16 = vpop.eup %1085  ;;  %1015 = vmatmul.msk.f32.vlgmr.msrb.gmra.mxu0 %vm88_vm0, %v1376_v15 }
 0x6ae   :  { %v747_v17 = vmul.f32 %v1086_v16, %v735_v8  ;;  %vm753_vm8 = vweird.f32 %v1086_v16 }
 0x6af   :  { %vm754_vm10 = vmor %vm752_vm9, %vm753_vm8 }
 0x6b0   :  { %v748_v18 = vmul.f32 %v1086_v16, %v747_v17 }
 0x6b2   :  { %v749_v19 = vmul.f32 0.5, %v748_v18 }
 0x6b4   :  { %v750_v20 = vsub.f32 1.5, %v749_v19 }
 0x6b6   :  { %v751_v21 = vmul.f32 %v1086_v16, %v750_v20 }
 0x6b8   :  { %v755_v22 = vsel %vm754_vm10, %v1086_v16, %v751_v21 }
 0x6b9   :  { %v757_v23 = vmul.f32 %v755_v22, %v723_v51 }
 0x6bb   :  { %v760_v24 = vmul.f32 %v758_v7, %v757_v23 }
 0x6bd   :  { %v1380_v25 = vadd.f32 %v761_v13, %v760_v24 }
 0x6bf   :  { %1016 = vmatmul.msk.f32.gmra.mxu0 %vm88_vm0, %v1380_v25 }
 0x72a   :  { %v788_v27 = vpop.f32.mrf.mxu0 }
 0x72b   :  { %v1385_v28 = vadd.f32 %v788_v27, %v764_v26 }
 0x72d   :  { %v1388_v29 = vmul.f32 0.70710677, %v1385_v28 }
 0x72f   :  { %v798_v30 = vmul.f32 %v1388_v29, %v1388_v29 }
 0x731   :  { %v799_v31 = vmin.f32 %v798_v30, 16.0 }
 0x733   :  { %v800_v9 = vmul.f32 2.1237322e-06, %v799_v31  ;;  %v811_v49 = vmul.f32 3.8918573e-05, %v799_v31 }
 0x735   :  { %v801_v34 = vadd.f32 0.00028619796, %v800_v9  ;;  %v812_v35 = vadd.f32 0.001143296, %v811_v49 }
 0x737   :  { %v802_v37 = vmul.f32 %v801_v34, %v799_v31  ;;  %v813_v38 = vmul.f32 %v812_v35, %v799_v31  ;;  %v794_v35 = vmul.f32 0.5, %v1385_v28 }
 0x739   :  { %v803_v40 = vadd.f32 0.0036580483, %v802_v37  ;;  %v814_v41 = vadd.f32 0.014752088, %v813_v38 }
 0x73b   :  { %v815_v43 = vmul.f32 %v814_v41, %v799_v31  ;;  %v804_v46 = vmul.f32 %v803_v40, %v799_v31 }
 0x73c   :  { %v791_v4 = vpop.f32.mrf.mxu0 }
 0x73d   :  { %v816_v47 = vadd.f32 0.112945676, %v815_v43  ;;  %v1392_v5 = vadd.f32 %v791_v4, %v764_v26  ;;  %v805_v53 = vadd.f32 0.05243302, %v804_v46 }
 0x73f   :  { %v817_v50 = vmul.f32 %v816_v47, %v799_v31  ;;  %v1395_v51 = vmul.f32 0.70710677, %v1392_v5  ;;  %v806_v58 = vmul.f32 %v805_v53, %v799_v31 }
 0x741   :  { %v818_v54 = vadd.f32 0.4994258, %v817_v50  ;;  %v838_v55 = vmul.f32 %v1395_v51, %v1395_v51  ;;  %v807_v63 = vadd.f32 0.18741608, %v806_v58 }
 0x743   :  { %v819_v56 = vmul.f32 %v818_v54, %v799_v31  ;;  %v839_v57 = vmin.f32 %v838_v55, 16.0  ;;  %v808_v7 = vmul.f32 %v807_v63, %v799_v31  ;;  %v795_v54 = vmul.f32 0.5, %v1392_v5 }
 0x745   :  { %v820_v59 = vadd.f32 1.0, %v819_v56  ;;  %v840_v11 = vmul.f32 2.1237322e-06, %v839_v57  ;;  %v851_v60 = vmul.f32 3.8918573e-05, %v839_v57 }
 0x746   :  { %v809_v16 = vadd.f32 1.1283791, %v808_v7 }
 0x747   :  { %1087 = vrcp.f32 %v820_v59  ;;  %v841_v61 = vadd.f32 0.00028619796, %v840_v11  ;;  %v852_v62 = vadd.f32 0.001143296, %v851_v60  ;;  %v832_v17 = vand.u32 2147483648, %v820_v59 }
 0x748   :  { %v830_v20 = vand.u32 2147483647, %v820_v59  ;;  %vm826_vm12 = vweird.f32 %v820_v59  ;;  %v810_v27 = vmul.f32 %v809_v16, %v1388_v29 }
 0x749   :  { %v842_v0 = vmul.f32 %v841_v61, %v839_v57  ;;  %v853_v1 = vmul.f32 %v852_v62, %v839_v57  ;;  %v833_v24 = vor.u32 1.1754944e-38, %v832_v17 }
 0x74a   :  { %vm831_vm14 = vcmp.eq.f32.partialorder %v830_v20, 8.507059e+37 }
 0x74b   :  { %v854_v2 = vadd.f32 0.014752088, %v853_v1  ;;  %v843_v8 = vadd.f32 0.0036580483, %v842_v0 }
 0x74d   :  { %v1088_v3 = vpop.eup %1087  ;;  %v855_v12 = vmul.f32 %v854_v2, %v839_v57  ;;  %v844_v18 = vmul.f32 %v843_v8, %v839_v57 }
 0x74e   :  { %v822_v10 = vmul.f32 %v1088_v3, %v820_v59  ;;  %vm827_vm11 = vweird.f32 %v1088_v3 }
 0x74f   :  { %v856_v14 = vadd.f32 0.112945676, %v855_v12  ;;  %vm828_vm13 = vmor %vm826_vm12, %vm827_vm11  ;;  %v845_v26 = vadd.f32 0.05243302, %v844_v18 }
 0x750   :  { %v823_v13 = vsub.f32 1.0, %v822_v10 }
 0x751   :  { %v857_v21 = vmul.f32 %v856_v14, %v839_v57  ;;  %v846_v33 = vmul.f32 %v845_v26, %v839_v57 }
 0x752   :  { %v824_v19 = vmul.f32 %v1088_v3, %v823_v13 }
 0x753   :  { %v858_v23 = vadd.f32 0.4994258, %v857_v21  ;;  %v847_v37 = vadd.f32 0.18741608, %v846_v33 }
 0x754   :  { %v825_v22 = vadd.f32 %v1088_v3, %v824_v19 }
 0x755   :  { %v859_v31 = vmul.f32 %v858_v23, %v839_v57  ;;  %v848_v40 = vmul.f32 %v847_v37, %v839_v57  ;;  %v882_v57 = vperm.slane %v1263_v6, 5 }
 0x756   :  { %v829_v30 = vsel %vm828_vm13, %v1088_v3, %v825_v22 }
 0x757   :  { %v834_v32 = vsel %vm831_vm14, %v833_v24, %v829_v30  ;;  %v860_v49 = vadd.f32 1.0, %v859_v31  ;;  %v849_v43 = vadd.f32 1.1283791, %v848_v40  ;;  %v959_v24 = vperm.slane %v1263_v6, 6 }
 0x758   :  { %v835_v9 = vmul.f32 %v834_v32, %v810_v27  ;;  %v962_v31 = vperm.slane %v1263_v6, 7 }
 0x759   :  { %1089 = vrcp.f32 %v860_v49  ;;  %v872_v42 = vand.u32 2147483648, %v860_v49  ;;  %v870_v45 = vand.u32 2147483647, %v860_v49  ;;  %vm866_vm2 = vweird.f32 %v860_v49 }
 0x75a   :  { %v1017_v34 = vclamps-f32 %v835_v9, 1.0  ;;  %v850_v28 = vmul.f32 %v849_v43, %v1395_v51 }
 0x75b   :  { %v873_v47 = vor.u32 1.1754944e-38, %v872_v42  ;;  %vm871_vm4 = vcmp.eq.f32.partialorder %v870_v45, 8.507059e+37 }
 0x75c   :  { %v878_v36 = vadd.f32 1.0, %v1017_v34 }
 0x75e   :  { %v880_v38 = vmul.f32 %v878_v36, %v794_v35 }
 0x75f   :  { %v1090_v39 = vpop.eup %1089 }
 0x760   :  { %1019 = vmatmul.msk.f32.vlgmr.msra.gmra.mxu3 %vm883_vm15, %v880_v38  ;;  %v862_v29 = vmul.f32 %v1090_v39, %v860_v49  ;;  %vm867_vm1 = vweird.f32 %v1090_v39 }
 0x761   :  { %vm868_vm3 = vmor %vm866_vm2, %vm867_vm1 }
 0x762   :  { %v863_v41 = vsub.f32 1.0, %v862_v29 }
 0x764   :  { %v864_v4 = vmul.f32 %v1090_v39, %v863_v41 }
 0x766   :  { %v865_v46 = vadd.f32 %v1090_v39, %v864_v4 }
 0x768   :  { %v869_v48 = vsel %vm868_vm3, %v1090_v39, %v865_v46 }
 0x769   :  { %v874_v50 = vsel %vm871_vm4, %v873_v47, %v869_v48 }
 0x76a   :  { %v875_v52 = vmul.f32 %v874_v50, %v850_v28 }
 0x76c   :  { %v1018_v53 = vclamps-f32 %v875_v52, 1.0 }
 0x76e   :  { %v879_v55 = vadd.f32 1.0, %v1018_v53 }
 0x770   :  { %v881_v56 = vmul.f32 %v879_v55, %v795_v54 }
 0x772   :  { %1020 = vmatmul.msk.f32.gmra.mxu3 %vm883_vm15, %v881_v56 }
 0x7e3   :  { %v907_v58 = vpop.f32.mrf.mxu3 }
 0x7e4   :  { %v908_v59 = vadd.f32 %v907_v58, %v882_v57 }
 0x7e6   :  { %v913_v11 = vadd.f32 %v908_v59, %v1376_v15 }
 0x7e8   :  { %v915_v60 = vsel %vm88_vm0, %v913_v11, 0.0 }
 0x7e9   :  { %916 = vadd.xlane.f32.xlu2 %v915_v60 }
 0x7f5   :  { %v910_v51 = vpop.f32.mrf.mxu3 }
 0x7f6   :  { %v911_v61 = vadd.f32 %v910_v51, %v882_v57 }
 0x7f8   :  { %v914_v62 = vadd.f32 %v911_v61, %v1380_v25 }
 0x7fa   :  { %v918_v63 = vsel %vm88_vm0, %v914_v62, 0.0 }
 0x7fb   :  { %919 = vadd.xlane.f32.xlu2 %v918_v63 }
 0x85c   :  { %v917_v5 = vpop.xlane.xlu2 %916 }
 0x85d   :  { %v921_v0 = vmul.f32 %v917_v5, %v1366_v44 }
 0x85f   :  { %v923_v1 = vsub.f32 %v913_v11, %v921_v0 }
 0x861   :  { %v925_v2 = vmul.f32 %v923_v1, %v923_v1 }
 0x863   :  { %v927_v3 = vsel %vm88_vm0, %v925_v2, 0.0 }
 0x864   :  { %928 = vadd.xlane.f32.xlu2 %v927_v3 }
 0x86e   :  { %v920_v7 = vpop.xlane.xlu2 %919 }
 0x86f   :  { %v922_v15 = vmul.f32 %v920_v7, %v1366_v44 }
 0x871   :  { %v924_v8 = vsub.f32 %v914_v62, %v922_v15 }
 0x873   :  { %v926_v10 = vmul.f32 %v924_v8, %v924_v8 }
 0x875   :  { %v930_v12 = vsel %vm88_vm0, %v926_v10, 0.0 }
 0x876   :  { %931 = vadd.xlane.f32.xlu2 %v930_v12 }
 0x8d7   :  { %v929_v25 = vpop.xlane.xlu2 %928 }
 0x8d8   :  { %v933_v13 = vmul.f32 %v929_v25, %v1366_v44 }
 0x8da   :  { %v935_v14 = vadd.f32 1e-12, %v933_v13 }
 0x8dc   :  { %1091 = vrsqrt.f32 %v935_v14  ;;  %vm943_vm6 = vweird.f32 %v935_v14 }
 0x8e2   :  { %v1092_v16 = vpop.eup %1091 }
 0x8e3   :  { %v938_v17 = vmul.f32 %v1092_v16, %v935_v14  ;;  %vm944_vm5 = vweird.f32 %v1092_v16 }
 0x8e4   :  { %vm945_vm7 = vmor %vm943_vm6, %vm944_vm5 }
 0x8e5   :  { %v939_v18 = vmul.f32 %v1092_v16, %v938_v17 }
 0x8e7   :  { %v940_v19 = vmul.f32 0.5, %v939_v18 }
 0x8e9   :  { %v941_v20 = vsub.f32 1.5, %v940_v19  ;;  %v932_v21 = vpop.xlane.xlu2 %931 }
 0x8ea   :  { %v934_v23 = vmul.f32 %v932_v21, %v1366_v44 }
 0x8eb   :  { %v942_v22 = vmul.f32 %v1092_v16, %v941_v20 }
 0x8ec   :  { %v936_v27 = vadd.f32 1e-12, %v934_v23 }
 0x8ed   :  { %v946_v26 = vsel %vm945_vm7, %v1092_v16, %v942_v22 }
 0x8ee   :  { %v957_v30 = vmul.f32 %v946_v26, %v923_v1  ;;  %1093 = vrsqrt.f32 %v936_v27  ;;  %vm953_vm9 = vweird.f32 %v936_v27 }
 0x8f0   :  { %v960_v32 = vmul.f32 %v959_v24, %v957_v30 }
 0x8f2   :  { %v963_v9 = vadd.f32 %v962_v31, %v960_v32 }
 0x8f4   :  { %965 = vst.msk [vmem:[#allocation8] sm:$0xff] %vm88_vm0, %v963_v9  ;;  %v1094_v49 = vpop.eup %1093 }
 0x8f5   :  { %v948_v33 = vmul.f32 %v1094_v49, %v936_v27  ;;  %vm954_vm8 = vweird.f32 %v1094_v49 }
 0x8f6   :  { %vm955_vm10 = vmor %vm953_vm9, %vm954_vm8 }
 0x8f7   :  { %v949_v34 = vmul.f32 %v1094_v49, %v948_v33 }
 0x8f9   :  { %v950_v35 = vmul.f32 0.5, %v949_v34 }
 0x8fb   :  { %v951_v36 = vsub.f32 1.5, %v950_v35 }
 0x8fd   :  { %v952_v44 = vmul.f32 %v1094_v49, %v951_v36 }
 0x8ff   :  { %v956_v37 = vsel %vm955_vm10, %v1094_v49, %v952_v44 }
 0x900   :  { %v958_v38 = vmul.f32 %v956_v37, %v924_v8 }
 0x902   :  { %v961_v6 = vmul.f32 %v959_v24, %v958_v38 }
 0x904   :  { %v964_v39 = vadd.f32 %v962_v31, %v961_v6 }
 0x906   :  { %966 = vst.msk [vmem:[#allocation8 + $0x8] sm:$0xff] %vm88_vm0, %v964_v39 }
 0x907   :  { %979 = dma.vmem_to_hbm [thread:$0]  %s972_s14, 256, %s974_s17, [#allocation4], %s1201_s24, %s1201_s24, %s1202_s1  }
 0x908   :  { %1195 = dma.done.wait [#allocation4], 256  }
 0x909   :  { %1196 = vsyncadd [#allocation4], 4294967040 }
 0x90a   :  { %984 = vsyncpa [#allocation3], 1 }
 0x90b   :  { %985 = vsyncpa [#allocation6], 1 }
 0x90c   :  { %986 = vsyncpa [#allocation4], 1 }

</bundles_post_ra>
